<compile_context>
chip_gen: v7x
topology: tpu7x:2x2x1
jax: 0.10.0
libtpu: 0.0.40
codegen_flags: <defaults>
</compile_context>

<pallas_src>
import functools

import jax
import jax.numpy as jnp
from jax.experimental import pallas as pl
from jax.experimental.pallas import tpu as pltpu

_MIB = 1024 * 1024


def _centers_loss_kernel(label_ref, feat_ref, centers_ref, out_ref, acc_ref, *,
                         n_tiles, has_overflow, use_select, ragged, pack_k,
                         center_dim):
    # label_ref:   (tile_rows, 1 or k) int32  VMEM
    # feat_ref:    (tile_rows, Dp)     native VMEM (streamed)
    # centers_ref: (C, D)              native VMEM (resident)
    # out_ref:     (1, 1, 1)           f32    VMEM (per-core partial sum)
    # acc_ref:     (1, Dp)             f32    VMEM scratch (lane-wide accumulator)
    c = pl.program_id(0)                      # "parallel" axis (v7x: one per TC)
    i = pl.program_id(1)                      # batch-tile axis ("arbitrary")
    tiles_per_core = pl.num_programs(1)
    tile_idx = c * tiles_per_core + i

    r, dp = feat_ref.shape
    n_classes = centers_ref.shape[0]

    @pl.when(i == 0)
    def _init():
        acc_ref[...] = jnp.zeros_like(acc_ref)

    def _accumulate():
        feat = feat_ref[...].astype(jnp.float32)       # cast after DMA
        labels = label_ref[...]                        # int32
        cen = centers_ref[...]                         # native dtype

        if pack_k > 1:
            # Lane-packed gather: lane j*D+d of a row holds sample j, feature d.
            d = center_dim
            lane = jax.lax.broadcasted_iota(jnp.int32, (1, dp), 1)
            label_exp = jnp.zeros((r, dp), jnp.int32)
            for j in range(pack_k):
                in_seg = (lane >= j * d) & (lane < (j + 1) * d)
                label_exp = jnp.where(in_seg, labels[:, j:j + 1], label_exp)
            cen_tiled = jnp.concatenate(
                [cen.astype(jnp.float32)] * pack_k, axis=1)        # (C, k*D), tiny
            cb = jnp.zeros((r, dp), jnp.float32)
            for cls in range(n_classes):
                cb = jnp.where(label_exp == cls, cen_tiled[cls:cls + 1, :], cb)
            if ragged:
                # Padded labels are -1 -> cb row is 0 and feat row is zeroed:
                # the padded row contributes exactly 0 (NaN-safe select).
                feat = jnp.where(label_exp >= 0, feat, 0.0)
        elif use_select:
            # VPU gather: one select per class (C small).  Labels >= C (invalid)
            # leave cb = 0, matching the previous kernel's documented behaviour.
            cb = jnp.zeros((r, dp), jnp.float32)
            for cls in range(n_classes):
                cb = jnp.where(labels == cls,
                               cen[cls:cls + 1, :].astype(jnp.float32), cb)
            if ragged:
                feat = jnp.where(labels >= 0, feat, 0.0)
        else:
            # MXU gather: one-hot in centers' native dtype (exact), f32 accumulate.
            col_ids = jax.lax.broadcasted_iota(jnp.int32, (r, n_classes), 1)
            one_hot = (col_ids == labels).astype(cen.dtype)
            cb = jax.lax.dot_general(
                one_hot, cen, (((1,), (0,)), ((), ())),
                precision=jax.lax.Precision.HIGHEST,
                preferred_element_type=jnp.float32)
            if ragged:
                feat = jnp.where(labels >= 0, feat, 0.0)

        diff = feat - cb
        # Sublane (axis-0) reduce only; the cross-lane reduce is deferred to the
        # finalize step so it is not on the per-step carried dependency chain.
        acc_ref[...] += jnp.sum(diff * diff, axis=0, keepdims=True)

    if has_overflow:
        # Steps beyond the real tile count (from the 2-core split) contribute nothing.
        pl.when(tile_idx < n_tiles)(_accumulate)
    else:
        _accumulate()

    @pl.when(i == tiles_per_core - 1)
    def _finalize():
        out_ref[...] = jnp.sum(acc_ref[...], keepdims=True).reshape(1, 1, 1)


def centers_loss(label, feat, centers, size_average=True, max_tile_elems=1 << 20):
    """Pallas implementation of CentersLoss.forward.

    label:   (B,) integer array (values assumed in [0, C))
    feat:    (B, ...) float array (flattened to (B, D) like the torch module)
    centers: (C, D) float array (the nn.Parameter)
    max_tile_elems: internal tuning/test knob (elements per feat tile).
    """
    B = feat.shape[0]
    feat2d = feat.reshape(B, -1)
    D = feat2d.shape[1]
    C, Dc = centers.shape
    if D != Dc:
        raise ValueError(
            "Center's dim: {0} should be equal to input feature's dim: {1}".format(Dc, D))

    batch_size = float(B) if size_average else 1.0

    itemsize = jnp.dtype(feat2d.dtype).itemsize
    sub = {4: 8, 2: 16, 1: 32}.get(itemsize, 8)       # sublane packing per dtype

    use_select = C <= 8                               # VPU-select gather threshold

    # ---- lane packing for small feature dims (free HBM reshape) -------------
    pack_k = 1
    if D < 128 and use_select:
        k = max(1, min(8, 128 // D))
        if k >= 2 and B % k == 0:
            pack_k = k

    if pack_k > 1:
        n_rows = B // pack_k
        dp = pack_k * D
        feat2d = feat2d.reshape(n_rows, dp)           # contiguous; no HBM copy
        label2d = label.astype(jnp.int32).reshape(n_rows, pack_k)
    else:
        n_rows = B
        dp = D
        label2d = label.astype(jnp.int32).reshape(n_rows, 1)

    # ---- tile selection ------------------------------------------------------
    ROW_CAP = 4096                                    # bounds lane-padded (rows,1) buffers
    tile_rows = max(sub, min(ROW_CAP, max_tile_elems // max(dp, 1)))
    tile_rows = (tile_rows // sub) * sub
    if tile_rows >= n_rows:
        tile_rows = n_rows                            # single full-extent block
    n_tiles = pl.cdiv(n_rows, tile_rows)
    ragged = (n_tiles * tile_rows != n_rows)

    # Pad ONLY the tiny label array so tail blocks hold a sentinel, never garbage.
    rows_padded = n_tiles * tile_rows
    if rows_padded != n_rows:
        label2d = jnp.pad(label2d, ((0, rows_padded - n_rows), (0, 0)),
                          constant_values=-1)

    n_par = 2 if n_tiles >= 2 else 1                  # v7x: 2 TCs; harmless elsewhere
    tiles_per_core = pl.cdiv(n_tiles, n_par)
    has_overflow = (n_par * tiles_per_core != n_tiles)

    def row_map(c, i):
        t = c * tiles_per_core + i
        if has_overflow:
            t = jnp.minimum(t, n_tiles - 1)           # clamp overflow steps (compute skipped)
        return (t, 0)

    kernel = functools.partial(
        _centers_loss_kernel,
        n_tiles=n_tiles, has_overflow=has_overflow, use_select=use_select,
        ragged=ragged, pack_k=pack_k, center_dim=D)

    # ---- VMEM budget (per-generation) & scheduler hint ----------------------
    try:
        vmem_cap = int(pltpu.get_tpu_info().vmem_capacity_bytes)
    except Exception:
        vmem_cap = 64 * _MIB                          # conservative (v7x-sized) fallback
    vmem_limit = min((vmem_cap * 3) // 4, 100 * _MIB)
    vmem_limit = max(vmem_limit, 32 * _MIB)

    gather_flops = 0 if use_select else 2 * n_rows * C * dp
    cost = pl.CostEstimate(
        flops=4 * B * D + gather_flops,
        transcendentals=0,
        bytes_accessed=(B * D * itemsize
                        + C * D * jnp.dtype(centers.dtype).itemsize
                        + rows_padded * 4 * max(pack_k, 1)
                        + n_par * 4))

    out = pl.pallas_call(
        kernel,
        out_shape=jax.ShapeDtypeStruct((n_par, 1, 1), jnp.float32),
        grid_spec=pltpu.PrefetchScalarGridSpec(
            num_scalar_prefetch=0,
            grid=(n_par, tiles_per_core),
            in_specs=[
                pl.BlockSpec((tile_rows, label2d.shape[1]), row_map),  # labels
                pl.BlockSpec((tile_rows, dp), row_map),                # feat (streamed)
                pl.BlockSpec((C, D), lambda c, i: (0, 0)),             # centers (resident)
            ],
            out_specs=pl.BlockSpec((1, 1, 1), lambda c, i: (c, 0, 0)),  # per-core partial
            scratch_shapes=[pltpu.VMEM((1, dp), jnp.float32)],          # lane-wide accum
        ),
        compiler_params=pltpu.CompilerParams(
            dimension_semantics=("parallel", "arbitrary"),
            vmem_limit_bytes=int(vmem_limit),
        ),
        cost_estimate=cost,
    )(label2d, feat2d, centers)

    # Final cross-core sum and the 1/(2*bs) scale happen here (cheap, off the kernel).
    return jnp.sum(out) / 2.0 / batch_size


def centers_loss_ref(label, feat, centers, size_average=True):
    """Pure-JAX reference (mirrors the torch forward)."""
    B = feat.shape[0]
    feat2d = feat.reshape(B, -1).astype(jnp.float32)
    cb = centers.astype(jnp.float32)[label.astype(jnp.int32)]
    bs = float(B) if size_average else 1.0
    return jnp.sum((feat2d - cb) ** 2) / 2.0 / bs


def _check(got, want, name):
    assert jnp.allclose(got, want, rtol=2e-5, atol=1e-4), (name, got, want)


if __name__ == "__main__":
    key = jax.random.PRNGKey(0)

    # Case 1: module-like shapes (C=4 centers, D=32, B=8) -> lane-packed select path.
    B, C, D = 8, 4, 32
    k1, k2, k3, key = jax.random.split(key, 4)
    feat = jax.random.normal(k1, (B, D), dtype=jnp.float32)
    label = jax.random.randint(k2, (B,), 0, C, dtype=jnp.int32)
    centers = jax.random.normal(k3, (C, D), dtype=jnp.float32)
    loss = jax.block_until_ready(centers_loss(label, feat, centers, size_average=True))
    _check(loss, centers_loss_ref(label, feat, centers, True), "case1")

    # Case 2: unpacked select path (B % k != 0), size_average=False.
    B2, C2, D2 = 20, 6, 40
    k1, k2, k3, key = jax.random.split(key, 4)
    feat2 = jax.random.normal(k1, (B2, D2), dtype=jnp.float32)
    label2 = jax.random.randint(k2, (B2,), 0, C2, dtype=jnp.int32)
    centers2 = jax.random.normal(k3, (C2, D2), dtype=jnp.float32)
    loss2 = jax.block_until_ready(centers_loss(label2, feat2, centers2, size_average=False))
    _check(loss2, centers_loss_ref(label2, feat2, centers2, False), "case2")

    # Case 3: one-hot MXU gather path (C > 8).
    B3, C3, D3 = 16, 16, 32
    k1, k2, k3, key = jax.random.split(key, 4)
    feat3 = jax.random.normal(k1, (B3, D3), dtype=jnp.float32)
    label3 = jax.random.randint(k2, (B3,), 0, C3, dtype=jnp.int32)
    centers3 = jax.random.normal(k3, (C3, D3), dtype=jnp.float32)
    loss3 = jax.block_until_ready(centers_loss(label3, feat3, centers3, size_average=True))
    _check(loss3, centers_loss_ref(label3, feat3, centers3, True), "case3")

    # Case 4: multi-tile grid + 2-way parallel split + ragged tail + overflow step.
    B4, C4, D4 = 300, 8, 128
    k1, k2, k3, key = jax.random.split(key, 4)
    feat4 = jax.random.normal(k1, (B4, D4), dtype=jnp.float32)
    label4 = jax.random.randint(k2, (B4,), 0, C4, dtype=jnp.int32)
    centers4 = jax.random.normal(k3, (C4, D4), dtype=jnp.float32)
    loss4 = jax.block_until_ready(
        centers_loss(label4, feat4, centers4, size_average=True,
                     max_tile_elems=128 * 64))
    _check(loss4, centers_loss_ref(label4, feat4, centers4, True), "case4")

    print("KERNEL_OK")
</pallas_src>

<mosaic_0001>
module attributes {stable_mosaic.version = 11 : i64} {
  func.func @_centers_loss_kernel(%arg0: i32, %arg1: i32, %arg2: memref<2x4xi32, #tpu.memory_space<vmem>>, %arg3: memref<2x128xf32, #tpu.memory_space<vmem>>, %arg4: memref<4x32xf32, #tpu.memory_space<vmem>>, %arg5: memref<1x1x1xf32, #tpu.memory_space<vmem>>, %arg6: memref<1x128xf32, #tpu.memory_space<vmem>>) attributes {dimension_semantics = [#tpu.dimension_semantics<parallel>, #tpu.dimension_semantics<arbitrary>], iteration_bounds = array<i64: 1, 1>, scalar_prefetch = 0 : i64, scratch_operands = 1 : i64, tpu.core_type = #tpu.core_type<tc>, window_params = [{transform_indices = @transform_0, window_bounds = array<i64: 2, 4>}, {transform_indices = @transform_1, window_bounds = array<i64: 2, 128>}, {pipeline_mode = #tpu.pipeline_mode<synchronous>, transform_indices = @transform_2, window_bounds = array<i64: 4, 32>}, {transform_indices = @transform_3, window_bounds = array<i64: 1, 1, 1>}]} {
    %c0_i32 = arith.constant 0 : i32
    %0 = arith.cmpi eq, %arg1, %c0_i32 : i32
    %1 = arith.extui %0 : i1 to i32
    %c0_i32_0 = arith.constant 0 : i32
    %2 = arith.cmpi ne, %1, %c0_i32_0 : i32
    scf.if %2 {
      %cst_19 = arith.constant 0.000000e+00 : f32
      %88 = vector.broadcast %cst_19 : f32 to vector<1x128xf32>
      %c0_20 = arith.constant 0 : index
      %c0_21 = arith.constant 0 : index
      %89 = vector.load %arg6[%c0_20, %c0_21] : memref<1x128xf32, #tpu.memory_space<vmem>>, vector<1x128xf32>
      tpu.vector_store %arg6[%c0_20, %c0_21], %88 {strides = array<i32>} : memref<1x128xf32, #tpu.memory_space<vmem>>, vector<1x128xf32>,
    } else {
    }
    %c0 = arith.constant 0 : index
    %c0_1 = arith.constant 0 : index
    %3 = vector.load %arg3[%c0, %c0_1] : memref<2x128xf32, #tpu.memory_space<vmem>>, vector<2x128xf32>
    %c0_2 = arith.constant 0 : index
    %c0_3 = arith.constant 0 : index
    %4 = vector.load %arg2[%c0_2, %c0_3] : memref<2x4xi32, #tpu.memory_space<vmem>>, vector<2x4xi32>
    %c0_4 = arith.constant 0 : index
    %c0_5 = arith.constant 0 : index
    %5 = vector.load %arg4[%c0_4, %c0_5] : memref<4x32xf32, #tpu.memory_space<vmem>>, vector<4x32xf32>
    %6 = tpu.iota {dimensions = array<i32: 1>} : vector<1x128xi32>
    %c0_i32_6 = arith.constant 0 : i32
    %7 = vector.broadcast %c0_i32_6 : i32 to vector<2x128xi32>
    %c0_i32_7 = arith.constant 0 : i32
    %8 = vector.broadcast %c0_i32_7 : i32 to vector<1x128xi32>
    %9 = arith.cmpi sge, %6, %8 : vector<1x128xi32>
    %c32_i32 = arith.constant 32 : i32
    %10 = vector.broadcast %c32_i32 : i32 to vector<1x128xi32>
    %11 = arith.cmpi slt, %6, %10 : vector<1x128xi32>
    %12 = arith.andi %9, %11 : vector<1x128xi1>
    %13 = vector.extract_strided_slice %4 {offsets = [0, 0], sizes = [2, 1], strides = [1, 1]} : vector<2x4xi32> to vector<2x1xi32>
    %14 = vector.shape_cast %12 : vector<1x128xi1> to vector<1x128xi1>
    %15 = vector.broadcast %14 : vector<1x128xi1> to vector<2x128xi1>
    %16 = vector.shape_cast %13 : vector<2x1xi32> to vector<2x1xi32>
    %17 = vector.broadcast %16 : vector<2x1xi32> to vector<2x128xi32>
    %18 = arith.select %15, %17, %7 : vector<2x128xi1>, vector<2x128xi32>
    %c32_i32_8 = arith.constant 32 : i32
    %19 = vector.broadcast %c32_i32_8 : i32 to vector<1x128xi32>
    %20 = arith.cmpi sge, %6, %19 : vector<1x128xi32>
    %c64_i32 = arith.constant 64 : i32
    %21 = vector.broadcast %c64_i32 : i32 to vector<1x128xi32>
    %22 = arith.cmpi slt, %6, %21 : vector<1x128xi32>
    %23 = arith.andi %20, %22 : vector<1x128xi1>
    %24 = vector.extract_strided_slice %4 {offsets = [0, 1], sizes = [2, 1], strides = [1, 1]} : vector<2x4xi32> to vector<2x1xi32>
    %25 = vector.shape_cast %23 : vector<1x128xi1> to vector<1x128xi1>
    %26 = vector.broadcast %25 : vector<1x128xi1> to vector<2x128xi1>
    %27 = vector.shape_cast %24 : vector<2x1xi32> to vector<2x1xi32>
    %28 = vector.broadcast %27 : vector<2x1xi32> to vector<2x128xi32>
    %29 = arith.select %26, %28, %18 : vector<2x128xi1>, vector<2x128xi32>
    %c64_i32_9 = arith.constant 64 : i32
    %30 = vector.broadcast %c64_i32_9 : i32 to vector<1x128xi32>
    %31 = arith.cmpi sge, %6, %30 : vector<1x128xi32>
    %c96_i32 = arith.constant 96 : i32
    %32 = vector.broadcast %c96_i32 : i32 to vector<1x128xi32>
    %33 = arith.cmpi slt, %6, %32 : vector<1x128xi32>
    %34 = arith.andi %31, %33 : vector<1x128xi1>
    %35 = vector.extract_strided_slice %4 {offsets = [0, 2], sizes = [2, 1], strides = [1, 1]} : vector<2x4xi32> to vector<2x1xi32>
    %36 = vector.shape_cast %34 : vector<1x128xi1> to vector<1x128xi1>
    %37 = vector.broadcast %36 : vector<1x128xi1> to vector<2x128xi1>
    %38 = vector.shape_cast %35 : vector<2x1xi32> to vector<2x1xi32>
    %39 = vector.broadcast %38 : vector<2x1xi32> to vector<2x128xi32>
    %40 = arith.select %37, %39, %29 : vector<2x128xi1>, vector<2x128xi32>
    %c96_i32_10 = arith.constant 96 : i32
    %41 = vector.broadcast %c96_i32_10 : i32 to vector<1x128xi32>
    %42 = arith.cmpi sge, %6, %41 : vector<1x128xi32>
    %c128_i32 = arith.constant 128 : i32
    %43 = vector.broadcast %c128_i32 : i32 to vector<1x128xi32>
    %44 = arith.cmpi slt, %6, %43 : vector<1x128xi32>
    %45 = arith.andi %42, %44 : vector<1x128xi1>
    %46 = vector.extract_strided_slice %4 {offsets = [0, 3], sizes = [2, 1], strides = [1, 1]} : vector<2x4xi32> to vector<2x1xi32>
    %47 = vector.shape_cast %45 : vector<1x128xi1> to vector<1x128xi1>
    %48 = vector.broadcast %47 : vector<1x128xi1> to vector<2x128xi1>
    %49 = vector.shape_cast %46 : vector<2x1xi32> to vector<2x1xi32>
    %50 = vector.broadcast %49 : vector<2x1xi32> to vector<2x128xi32>
    %51 = arith.select %48, %50, %40 : vector<2x128xi1>, vector<2x128xi32>
    %52 = tpu.concatenate %5, %5, %5, %5 in 1 : vector<4x32xf32>, vector<4x32xf32>, vector<4x32xf32>, vector<4x32xf32> -> vector<4x128xf32>
    %cst = arith.constant 0.000000e+00 : f32
    %53 = vector.broadcast %cst : f32 to vector<2x128xf32>
    %c0_i32_11 = arith.constant 0 : i32
    %54 = vector.broadcast %c0_i32_11 : i32 to vector<2x128xi32>
    %55 = arith.cmpi eq, %51, %54 : vector<2x128xi32>
    %56 = vector.extract_strided_slice %52 {offsets = [0, 0], sizes = [1, 128], strides = [1, 1]} : vector<4x128xf32> to vector<1x128xf32>
    %57 = vector.shape_cast %56 : vector<1x128xf32> to vector<1x128xf32>
    %58 = vector.broadcast %57 : vector<1x128xf32> to vector<2x128xf32>
    %59 = arith.select %55, %58, %53 : vector<2x128xi1>, vector<2x128xf32>
    %c1_i32 = arith.constant 1 : i32
    %60 = vector.broadcast %c1_i32 : i32 to vector<2x128xi32>
    %61 = arith.cmpi eq, %51, %60 : vector<2x128xi32>
    %62 = vector.extract_strided_slice %52 {offsets = [1, 0], sizes = [1, 128], strides = [1, 1]} : vector<4x128xf32> to vector<1x128xf32>
    %63 = vector.shape_cast %62 : vector<1x128xf32> to vector<1x128xf32>
    %64 = vector.broadcast %63 : vector<1x128xf32> to vector<2x128xf32>
    %65 = arith.select %61, %64, %59 : vector<2x128xi1>, vector<2x128xf32>
    %c2_i32 = arith.constant 2 : i32
    %66 = vector.broadcast %c2_i32 : i32 to vector<2x128xi32>
    %67 = arith.cmpi eq, %51, %66 : vector<2x128xi32>
    %68 = vector.extract_strided_slice %52 {offsets = [2, 0], sizes = [1, 128], strides = [1, 1]} : vector<4x128xf32> to vector<1x128xf32>
    %69 = vector.shape_cast %68 : vector<1x128xf32> to vector<1x128xf32>
    %70 = vector.broadcast %69 : vector<1x128xf32> to vector<2x128xf32>
    %71 = arith.select %67, %70, %65 : vector<2x128xi1>, vector<2x128xf32>
    %c3_i32 = arith.constant 3 : i32
    %72 = vector.broadcast %c3_i32 : i32 to vector<2x128xi32>
    %73 = arith.cmpi eq, %51, %72 : vector<2x128xi32>
    %74 = vector.extract_strided_slice %52 {offsets = [3, 0], sizes = [1, 128], strides = [1, 1]} : vector<4x128xf32> to vector<1x128xf32>
    %75 = vector.shape_cast %74 : vector<1x128xf32> to vector<1x128xf32>
    %76 = vector.broadcast %75 : vector<1x128xf32> to vector<2x128xf32>
    %77 = arith.select %73, %76, %71 : vector<2x128xi1>, vector<2x128xf32>
    %78 = arith.subf %3, %77 : vector<2x128xf32>
    %c0_12 = arith.constant 0 : index
    %c0_13 = arith.constant 0 : index
    %79 = vector.load %arg6[%c0_12, %c0_13] : memref<1x128xf32, #tpu.memory_space<vmem>>, vector<1x128xf32>
    %80 = arith.mulf %78, %78 : vector<2x128xf32>
    %cst_14 = arith.constant dense<0.000000e+00> : vector<128xf32>
    %81 = vector.multi_reduction <add>, %80, %cst_14 [0] : vector<2x128xf32> to vector<128xf32>
    %82 = vector.shape_cast %81 : vector<128xf32> to vector<1x128xf32>
    %83 = arith.addf %79, %82 : vector<1x128xf32>
    %c0_15 = arith.constant 0 : index
    %c0_16 = arith.constant 0 : index
    %84 = vector.load %arg6[%c0_15, %c0_16] : memref<1x128xf32, #tpu.memory_space<vmem>>, vector<1x128xf32>
    tpu.vector_store %arg6[%c0_15, %c0_16], %83 {strides = array<i32>} : memref<1x128xf32, #tpu.memory_space<vmem>>, vector<1x128xf32>,
    %c0_i32_17 = arith.constant 0 : i32
    %85 = arith.cmpi eq, %arg1, %c0_i32_17 : i32
    %86 = arith.extui %85 : i1 to i32
    %c0_i32_18 = arith.constant 0 : i32
    %87 = arith.cmpi ne, %86, %c0_i32_18 : i32
    scf.if %87 {
      %c0_19 = arith.constant 0 : index
      %c0_20 = arith.constant 0 : index
      %88 = vector.load %arg6[%c0_19, %c0_20] : memref<1x128xf32, #tpu.memory_space<vmem>>, vector<1x128xf32>
      %89 = vector.shape_cast %88 : vector<1x128xf32> to vector<1x1x128xf32>
      %cst_21 = arith.constant dense<0.000000e+00> : vector<1xf32>
      %90 = vector.multi_reduction <add>, %89, %cst_21 [1, 2] : vector<1x1x128xf32> to vector<1xf32>
      %91 = vector.shape_cast %90 : vector<1xf32> to vector<1x1x1xf32>
      %92 = vector.extract %91[0, 0, 0] : f32 from vector<1x1x1xf32>
      %93 = vector.broadcast %92 : f32 to vector<1x1xf32>
      %94 = vector.shape_cast %93 : vector<1x1xf32> to vector<1x1x1xf32>
      %c0_22 = arith.constant 0 : index
      %c0_23 = arith.constant 0 : index
      %c0_24 = arith.constant 0 : index
      %95 = vector.load %arg5[%c0_22, %c0_23, %c0_24] : memref<1x1x1xf32, #tpu.memory_space<vmem>>, vector<1x1x1xf32>
      tpu.vector_store %arg5[%c0_22, %c0_23, %c0_24], %94 {strides = array<i32>} : memref<1x1x1xf32, #tpu.memory_space<vmem>>, vector<1x1x1xf32>,
    } else {
    }
    return
  }
  func.func @transform_0(%arg0: i32, %arg1: i32) -> (i32, i32) {
    %c1_i32 = arith.constant 1 : i32
    %0 = arith.muli %arg0, %c1_i32 : i32
    %1 = arith.addi %0, %arg1 : i32
    %c0_i32 = arith.constant 0 : i32
    %c0_i32_0 = arith.constant 0 : i32
    return %1, %c0_i32 : i32, i32
  }
  func.func @transform_1(%arg0: i32, %arg1: i32) -> (i32, i32) {
    %c1_i32 = arith.constant 1 : i32
    %0 = arith.muli %arg0, %c1_i32 : i32
    %1 = arith.addi %0, %arg1 : i32
    %c0_i32 = arith.constant 0 : i32
    %c0_i32_0 = arith.constant 0 : i32
    return %1, %c0_i32 : i32, i32
  }
  func.func @transform_2(%arg0: i32, %arg1: i32) -> (i32, i32) {
    %c0_i32 = arith.constant 0 : i32
    %c0_i32_0 = arith.constant 0 : i32
    %c0_i32_1 = arith.constant 0 : i32
    return %c0_i32, %c0_i32_0 : i32, i32
  }
  func.func @transform_3(%arg0: i32, %arg1: i32) -> (i32, i32, i32) {
    %c0_i32 = arith.constant 0 : i32
    %c0_i32_0 = arith.constant 0 : i32
    %c0_i32_1 = arith.constant 0 : i32
    return %arg0, %c0_i32, %c0_i32_0 : i32, i32, i32
  }
}

</mosaic_0001>

<bundles_post_ra>
// kernel: tpu_custom_call.1
= control target key start
LH: loop header
LB: loop body
LE: loop exit
PB: predicated region body
PF: predicated region fallthrough
CT: control target
= control target key end

     0   :  { %8 = vsyncpa [#allocation4], 0  ;;  %s311_s0 = inlined_call_operand.hbm [shape: s32[2,4], index: 0, kind: input, shape index: {}]   ;;  %s312_s1 = inlined_call_operand.vmem [shape: f32[2,128], index: 1, kind: input, shape index: {}]   ;;  %s313_s2 = inlined_call_operand.vmem [shape: f32[4,32], index: 2, kind: input, shape index: {}]   ;;  %s314_s3 = inlined_call_operand.hbm [shape: f32[1,1,1], index: 3, kind: output, shape index: {}]  }
   0x1   :  { %9 = vsyncpa [#allocation5], 0  ;;  %s251_s12 = smov [#allocation3]   ;;  %s203_s16 = scalar_lea.hbm %s311_s0, 32 }
   0x2   :  { %s19_s13 = sshll.u32 %s251_s12, 4  ;;  %p204_p0 = scmp.ne.s32.totalorder %s311_s0, %s203_s16  ;;  %s20_s13 = int_to_ptr.vmem [resolvable:$true] %s19_s13 }
   0x3   :  { %p207_p1 = scmp.lt.u32.totalorder %s203_s16, %s311_s0 }
   0x5   :  { %p209_p2 = pnand %p207_p1, %p204_p0 }
   0x7   :  { %212 = shalt.err (!%p209_p2)
}
   0x8   :  { %s213_s21 = scalar_lea.vmem %s20_s13, 32  ;;  %p218_p4 = scmp.lt.s32.totalorder %s20_s13, %s20_s13 }
   0x9   :  { %p214_p3 = scmp.ne.s32.totalorder %s20_s13, %s213_s21  ;;  %p219_p5 = scmp.lt.s32.totalorder %s213_s21, %s213_s21 }
   0xb   :  { %p220_p6 = por %p219_p5, %p218_p4 }
   0xd   :  { %p221_p7 = pnand %p220_p6, %p214_p3 }
   0xf   :  { %224 = shalt.err (!%p221_p7)
}
  0x10   :  { %22 = dma.hbm_to_vmem [thread:$0]  %s311_s0, 32, %s20_s13, [#allocation4]  }
  0x11   :  { %247 = dma.done.wait [#allocation4], 32  }
  0x12   :  { %248 = vsyncadd [#allocation4], 4294967264  ;;  %v252_v0 = vmov 0.0   ;;  %v253_v1 = vmov 2   ;;  %v254_v2 = vmov 0   ;;  %v255_v4 = vmov 3  }
  0x13   :  { %52 = vst [vmem:[#allocation2] sm:$0x1] %v252_v0  ;;  %200 = vset.pattern.permute.xlu1 %v253_v1  ;;  %198 = vset.pattern.permute.xlu0 %v254_v2  ;;  %v54_v3 = vld [vmem:[#allocation3] sm:$0x3]  ;;  %v256_v5 = vmov 1   ;;  %s257_s0 = smov 32   ;;  %v56_v7 = vlaneseq }
  0x14   :  { %82 = vperm.xlu1 %200, %v54_v3   ;;  %64 = vperm.xlu0 %198, %v54_v3   ;;  %v55_v6 = vld [vmem:[%s313_s2] sm:$0xf]  ;;  %s258_s26 = smov 64   ;;  %s259_s27 = smov 96   ;;  %vm104_vm7 = vcmask 261120   ;;  %vm106_vm9 = vcmask 523264  }
  0x15   :  { %v57_v8 = vand.u32 127, %v56_v7  ;;  %v112_v15 = vshrl.u32 %v56_v7, 7  ;;  %vm108_vm10 = vcmask 785408   ;;  %v53_v32 = vld [vmem:[%s312_s1] sm:$0x3]  ;;  %vm137_vm15 = vcmask 1041408  }
  0x16   :  { %s260_s1 = smov [#allocation6]  }
  0x17   :  { %vm59_vm0 = vcmp.lt.s32.totalorder %v57_v8, 32  ;;  %vm67_vm1 = vcmp.ge.s32.totalorder %v57_v8, 32  ;;  %vm68_vm2 = vcmp.lt.s32.totalorder %v57_v8, 64  ;;  %vm76_vm4 = vcmp.ge.s32.totalorder %v57_v8, 64  ;;  %s171_s29 = sshll.u32 %s260_s1, 4  ;;  %s172_s29 = int_to_ptr.vmem [resolvable:$true] %s171_s29 }
  0x18   :  { %201 = vset.pattern.permute.xlu1 %v255_v4  ;;  %199 = vset.pattern.permute.xlu0 %v256_v5  ;;  %vm69_vm3 = vmand %vm67_vm1, %vm68_vm2  ;;  %vm77_vm5 = vcmp.lt.s32.totalorder %v57_v8, 96  ;;  %vm85_vm8 = vcmp.ge.s32.totalorder %v57_v8, 96  ;;  %v113_v20 = vsub.s32 0, %v112_v15  ;;  %v119_v21 = vsub.s32 1, %v112_v15  ;;  %s225_s4 = scalar_lea.vmem %s172_s29, 16  ;;  %s229_s5 = scalar_lea.vmem %s172_s29, 32 }
  0x19   :  { %91 = vperm.xlu1 %201, %v54_v3   ;;  %73 = vperm.xlu0 %199, %v54_v3   ;;  %vm78_vm6 = vmand %vm76_vm4, %vm77_vm5  ;;  %v125_v24 = vsub.s32 2, %v112_v15  ;;  %v131_v26 = vsub.s32 3, %v112_v15  ;;  %vm163_vm1 = vcmask 0   ;;  %p226_p8 = scmp.ne.s32.totalorder %s172_s29, %s225_s4  ;;  %p230_p9 = scmp.lt.s32.totalorder %s172_s29, %s172_s29 }
  0x1a   :  { %v135_v45 = vld [vmem:[#allocation2] sm:$0x1]  ;;  %p231_p10 = scmp.lt.s32.totalorder %s229_s5, %s225_s4 }
  0x1c   :  { %p232_p11 = por %p231_p10, %p230_p9 }
  0x1d   :  { %95 = vrot.lane.b32.xlu1 %v55_v6, %s257_s0  ;;  %98 = vrot.lane.b32.xlu0 %v55_v6, %s258_s26 }
  0x1e   :  { %202 = vset.pattern.permute.xlu0 %v255_v4  ;;  %p233_p12 = pnand %p232_p11, %p226_p8 }
  0x21   :  { %101 = vrot.lane.b32.xlu1 %v55_v6, %s259_s27 }
  0x93   :  { %v83_v9 = vpop.permute.xlu1 %82  ;;  %v65_v10 = vpop.permute.xlu0 %64 }
  0x94   :  { %v66_v11 = vsel %vm59_vm0, %v65_v10, 0  ;;  %vm151_vm0 = vcmask 1040384  }
  0x98   :  { %v92_v12 = vpop.permute.xlu1 %91  ;;  %v74_v13 = vpop.permute.xlu0 %73 }
  0x99   :  { %v75_v14 = vsel %vm69_vm3, %v74_v13, %v66_v11 }
  0x9a   :  { %v84_v17 = vsel %vm78_vm6, %v83_v9, %v75_v14 }
  0x9b   :  { %v93_v22 = vsel %vm85_vm8, %v92_v12, %v84_v17 }
  0x9c   :  { %v96_v16 = vpop.permute.xlu1 %95  ;;  %v99_v19 = vpop.permute.xlu0 %98  ;;  %vm110_vm11 = vcmp.eq.s32.totalorder %v93_v22, 0  ;;  %vm116_vm12 = vcmp.eq.s32.totalorder %v93_v22, 1  ;;  %vm122_vm13 = vcmp.eq.s32.totalorder %v93_v22, 2  ;;  %vm128_vm14 = vcmp.eq.s32.totalorder %v93_v22, 3 }
  0x9d   :  { %v105_v18 = vsel %vm104_vm7, %v55_v6, %v96_v16 }
  0x9e   :  { %v107_v23 = vsel %vm106_vm9, %v105_v18, %v99_v19 }
  0xa0   :  { %v102_v25 = vpop.permute.xlu1 %101 }
  0xa1   :  { %v109_v27 = vsel %vm108_vm10, %v107_v23, %v102_v25 }
  0xa2   :  { %v114_v28 = vrot.slane %v109_v27, %v113_v20  ;;  %v120_v29 = vrot.slane %v109_v27, %v119_v21  ;;  %v126_v31 = vrot.slane %v109_v27, %v125_v24  ;;  %v132_v34 = vrot.slane %v109_v27, %v131_v26 }
  0xa4   :  { %v115_v30 = vsel %vm110_vm11, %v114_v28, 0.0 }
  0xa5   :  { %v121_v33 = vsel %vm116_vm12, %v120_v29, %v115_v30 }
  0xa6   :  { %v127_v35 = vsel %vm122_vm13, %v126_v31, %v121_v33 }
  0xa7   :  { %v133_v36 = vsel %vm128_vm14, %v132_v34, %v127_v35 }
  0xa8   :  { %v134_v37 = vsub.f32 %v53_v32, %v133_v36 }
  0xaa   :  { %v136_v38 = vmul.f32 %v134_v37, %v134_v37 }
  0xac   :  { %v138_v39 = vsel %vm137_vm15, %v136_v38, 0.0 }
  0xad   :  { %v139_v40 = vrot.slane %v138_v39, 4 }
  0xaf   :  { %v140_v41 = vadd.f32 %v139_v40, %v138_v39 }
  0xb1   :  { %v141_v42 = vrot.slane %v140_v41, 2 }
  0xb3   :  { %v142_v43 = vadd.f32 %v141_v42, %v140_v41 }
  0xb5   :  { %v143_v44 = vrot.slane %v142_v43, 1 }
  0xb7   :  { %v144_v46 = vadd.f32 %v143_v44, %v142_v43 }
  0xb9   :  { %v145_v47 = vadd.f32 %v144_v46, %v135_v45 }
  0xbb   :  { %146 = vst [vmem:[#allocation2] sm:$0x1] %v145_v47 }
  0xc2   :  { %v150_v48 = vld [vmem:[#allocation2] sm:$0x1] }
  0xc3   :  { %v152_v49 = vsel %vm151_vm0, %v150_v48, 0.0 }
  0xc4   :  { %153 = vadd.xlane.f32.xlu0 %v152_v49 }
 0x151   :  { %v154_v50 = vpop.xlane.xlu0 %153 }
 0x152   :  { %v155_v51 = vrot.slane %v154_v50, 4 }
 0x154   :  { %v156_v52 = vadd.f32 %v155_v51, %v154_v50 }
 0x156   :  { %v157_v53 = vrot.slane %v156_v52, 2 }
 0x158   :  { %v158_v54 = vadd.f32 %v157_v53, %v156_v52 }
 0x15a   :  { %v159_v55 = vrot.slane %v158_v54, 1 }
 0x15c   :  { %v160_v56 = vadd.f32 %v159_v55, %v158_v54 }
 0x15e   :  { %186 = vpush %v160_v56 }
 0x18f   :  { %s187_s30 = spop %186 }
 0x190   :  { %v162_v57 = vstv %s187_s30 }
 0x191   :  { %164 = vst.msk [vmem:[#allocation6] sm:$0x1] %vm163_vm1, %v162_v57 }
 0x192   :  { %236 = shalt.err (!%p233_p12)
}
 0x193   :  { %s237_s8 = scalar_lea.hbm %s314_s3, 16 }
 0x194   :  { %p238_p13 = scmp.ne.s32.totalorder %s314_s3, %s237_s8  ;;  %p241_p0 = scmp.lt.u32.totalorder %s237_s8, %s314_s3 }
 0x196   :  { %p243_p1 = pnand %p241_p0, %p238_p13 }
 0x198   :  { %246 = shalt.err (!%p243_p1)
}
 0x199   :  { %174 = dma.vmem_to_hbm [thread:$0]  %s172_s29, 16, %s314_s3, [#allocation5]  }
 0x19a   :  { %249 = dma.done.wait [#allocation5], 16  }
 0x19b   :  { %250 = vsyncadd [#allocation5], 4294967280 }
 0x19c   :  { %178 = vsyncpa [#allocation4], 1 }
 0x19d   :  { %179 = vsyncpa [#allocation5], 1 }

</bundles_post_ra>
